<compile_context>
chip_gen: v6e
topology: v6e:2x2x1
jax: 0.10.0
libtpu: 0.0.40
codegen_flags: <defaults>
</compile_context>

<pallas_src>
import functools

import jax
import jax.numpy as jnp
from jax.experimental import pallas as pl
from jax.experimental.pallas import tpu as pltpu


def _round_up(x, m):
    return (x + m - 1) // m * m


def _resident_spec(block_shape, index_map):
    """BlockSpec with a constant index map; single-buffered when supported."""
    try:
        return pl.BlockSpec(block_shape, index_map, pipeline_mode=pl.Buffered(1))
    except (AttributeError, TypeError):
        return pl.BlockSpec(block_shape, index_map)


def skip_gram_kernel(idx_ref, emb_hbm, w_ref, b_ref, out_ref, emb_buf, sem):
    """Fused embedding DMA-gather + linear + log_softmax for one batch tile.

    idx_ref : (B_pad,)        int32     SMEM  scalar-prefetched token indices
    emb_hbm : (V, E_pad)      f32/bf16  HBM   full embedding table (not tiled)
    w_ref   : (E_pad, O_pad)  f32/bf16  VMEM  linear weight (pre-transposed), resident
    b_ref   : (1, O_pad)      f32       VMEM  bias; padded lanes hold -1e30
    out_ref : (TB, O_pad)     f32       VMEM  log-probabilities for this tile
    emb_buf : (2, TB, E_pad)  f32/bf16  VMEM  double-buffered gathered rows
    sem     : (2,)                      DMA   one semaphore per buffer slot
    """
    i = pl.program_id(0)
    nsteps = pl.num_programs(0)
    tb = out_ref.shape[0]

    def issue_gather(tile, slot):
        base = tile * tb

        @pl.loop(0, tb)
        def _(r):
            row = idx_ref[base + r]
            pltpu.make_async_copy(
                emb_hbm.at[pl.ds(row, 1), :],
                emb_buf.at[slot, pl.ds(r, 1), :],
                sem.at[slot],
            ).start()

    # Prime the pipeline with tile 0 on the first step.
    @pl.when(i == 0)
    def _():
        issue_gather(0, 0)

    # Prefetch the NEXT tile before waiting on the current one so its gather
    # overlaps this step's matmul + log_softmax.  (All SMEM scalar reads for
    # the next tile happen before any .wait().)
    @pl.when(i + 1 < nsteps)
    def _():
        issue_gather(i + 1, (i + 1) % 2)

    slot = i % 2

    # Wait for the current tile's TB row copies.  Per-row waits against the
    # shared per-slot semaphore: total decrements == total increments, so this
    # is correct regardless of the DMA semaphore's counting unit.
    @pl.loop(0, tb)
    def _(r):
        pltpu.make_async_copy(
            emb_hbm.at[pl.ds(0, 1), :],              # src only sets the wait size
            emb_buf.at[slot, pl.ds(r, 1), :],
            sem.at[slot],
        ).wait()

    x = emb_buf[slot]

    # --- linear layer (MXU, f32 accumulation) ---
    lin = jnp.dot(x, w_ref[...], preferred_element_type=jnp.float32) + b_ref[...]

    # --- log_softmax over the last axis ---
    # Padded O lanes carry ~-1e30 (from the padded bias): exp underflows to 0,
    # so they perturb neither the row max nor the normalizer.
    m = jnp.max(lin, axis=-1, keepdims=True)
    shifted = lin - m
    lse = jnp.log(jnp.sum(jnp.exp(shifted), axis=-1, keepdims=True))
    out_ref[...] = shifted - lse


def prepare_skip_gram_params(emb_table, lin_weight, lin_bias,
                             param_dtype=jnp.float32):
    """One-time padding/transpose of the parameters (keep OUT of the hot path).

    emb_table: (V, E); lin_weight: (O, E); lin_bias: (O,).
    Returns (emb_pad, w_t_pad, bias_pad) with lane-dense (multiple-of-128)
    trailing dims.  Bias stays f32 (softmax math is f32); padded bias lanes
    hold -1e30 so they vanish from the softmax normalizer.
    """
    V, E = emb_table.shape
    O = lin_weight.shape[0]
    e_pad = _round_up(E, 128)
    o_pad = _round_up(O, 128)

    emb_pad = jnp.pad(emb_table.astype(param_dtype), ((0, 0), (0, e_pad - E)))
    w_t_pad = jnp.pad(lin_weight.astype(param_dtype).T,
                      ((0, e_pad - E), (0, o_pad - O)))
    bias_pad = jnp.pad(lin_bias.astype(jnp.float32), (0, o_pad - O),
                       constant_values=-1e30).reshape(1, o_pad)
    return emb_pad, w_t_pad, bias_pad


@functools.partial(jax.jit, static_argnames=("out_dim", "tb"))
def skip_gram_forward(indices, emb_pad, w_t_pad, bias_pad, *, out_dim, tb=128):
    """indices: (B,) int; pre-padded params from prepare_skip_gram_params."""
    B = indices.shape[0]
    V, e_pad = emb_pad.shape
    o_pad = w_t_pad.shape[1]
    assert tb % 8 == 0, "batch tile must be a sublane multiple"

    b_pad = _round_up(max(B, tb), tb)
    n_tiles = b_pad // tb

    # Clamp (deliberate deviation from nn.Embedding, which raises on OOB) and
    # pad the batch to a tile multiple.  This is the only per-call padding.
    idx = jnp.clip(indices.astype(jnp.int32), 0, V - 1)
    idx = jnp.pad(idx, (0, b_pad - B))

    # VMEM budget: resident W^T + bias (x2 in case single-buffering is
    # unavailable), double-buffered gather scratch, double-buffered out block.
    w_bytes = 2 * e_pad * o_pad * w_t_pad.dtype.itemsize
    b_bytes = 2 * o_pad * 4
    g_bytes = 2 * tb * e_pad * emb_pad.dtype.itemsize
    o_bytes = 2 * tb * o_pad * 4
    vmem_limit = int(min(max(w_bytes + b_bytes + g_bytes + o_bytes + (4 << 20),
                             16 << 20), 48 << 20))

    grid_spec = pltpu.PrefetchScalarGridSpec(
        num_scalar_prefetch=1,
        grid=(n_tiles,),
        in_specs=[
            pl.BlockSpec(memory_space=pl.ANY),                           # table in HBM
            _resident_spec((e_pad, o_pad), lambda i, idx_ref: (0, 0)),   # W^T (resident)
            _resident_spec((1, o_pad), lambda i, idx_ref: (0, 0)),       # bias (resident)
        ],
        out_specs=pl.BlockSpec((tb, o_pad), lambda i, idx_ref: (i, 0)),
        scratch_shapes=[
            pltpu.VMEM((2, tb, e_pad), emb_pad.dtype),
            pltpu.SemaphoreType.DMA((2,)),
        ],
    )

    out = pl.pallas_call(
        skip_gram_kernel,
        out_shape=jax.ShapeDtypeStruct((b_pad, o_pad), jnp.float32),
        grid_spec=grid_spec,
        # "arbitrary": the cross-step gather prefetch requires strictly
        # sequential grid execution (see kernel comments).
        compiler_params=pltpu.CompilerParams(
            dimension_semantics=("arbitrary",),
            vmem_limit_bytes=vmem_limit),
    )(idx, emb_pad, w_t_pad, bias_pad)

    return out[:B, :out_dim]


if __name__ == "__main__":
    # skip_gram(input_dim=V, embedding_dim=E, output_dim=O) on B token ids.
    # B > batch tile so the grid has 2 steps and the cross-step double-buffered
    # gather path is exercised; E/O are not multiples of 128 so the padding
    # paths are exercised too.
    B, V, E, O = 200, 512, 64, 80

    key = jax.random.PRNGKey(0)
    k_emb, k_w, k_b, k_idx = jax.random.split(key, 4)

    # nn.Embedding default init: N(0, 1)
    emb_table = jax.random.normal(k_emb, (V, E), dtype=jnp.float32)
    # nn.Linear default init: U(-1/sqrt(E), 1/sqrt(E))
    bound = 1.0 / (E ** 0.5)
    lin_weight = jax.random.uniform(k_w, (O, E), jnp.float32, -bound, bound)
    lin_bias = jax.random.uniform(k_b, (O,), jnp.float32, -bound, bound)

    indices = jax.random.randint(k_idx, (B,), 0, V, dtype=jnp.int32)

    # One-time parameter preparation (outside the per-call hot path).
    params = prepare_skip_gram_params(emb_table, lin_weight, lin_bias)

    out = jax.block_until_ready(skip_gram_forward(indices, *params, out_dim=O))

    # Pure-JAX reference
    ref = jax.nn.log_softmax(emb_table[indices] @ lin_weight.T + lin_bias, axis=1)
    assert out.shape == (B, O)
    err = float(jnp.max(jnp.abs(out - ref)))
    assert jnp.allclose(out, ref, atol=1e-5, rtol=1e-5), err

    # Small-batch path (heavy batch padding, single grid step).
    idx_small = indices[:5]
    out_small = jax.block_until_ready(
        skip_gram_forward(idx_small, *params, out_dim=O))
    ref_small = jax.nn.log_softmax(
        emb_table[idx_small] @ lin_weight.T + lin_bias, axis=1)
    assert jnp.allclose(out_small, ref_small, atol=1e-5, rtol=1e-5)

    print("KERNEL_OK")
</pallas_src>

<mosaic_0001>
module attributes {stable_mosaic.version = 11 : i64} {
  func.func @skip_gram_kernel(%arg0: i32, %arg1: memref<256xi32, #tpu.memory_space<smem>>, %arg2: memref<512x128xf32, #tpu.memory_space<any>>, %arg3: memref<128x128xf32, #tpu.memory_space<vmem>>, %arg4: memref<1x128xf32, #tpu.memory_space<vmem>>, %arg5: memref<128x128xf32, #tpu.memory_space<vmem>>, %arg6: memref<2x128x128xf32, #tpu.memory_space<vmem>>, %arg7: memref<2x!tpu.dma_semaphore, #tpu.memory_space<semaphore_mem>>) attributes {dimension_semantics = [#tpu.dimension_semantics<arbitrary>], iteration_bounds = array<i64: 2>, scalar_prefetch = 1 : i64, scratch_operands = 2 : i64, tpu.core_type = #tpu.core_type<tc>, window_params = [{}, {pipeline_mode = #tpu.pipeline_mode<synchronous>, transform_indices = @transform_1, window_bounds = array<i64: 128, 128>}, {pipeline_mode = #tpu.pipeline_mode<synchronous>, transform_indices = @transform_2, window_bounds = array<i64: 1, 128>}, {transform_indices = @transform_3, window_bounds = array<i64: 128, 128>}]} {
    %c0_i32 = arith.constant 0 : i32
    %0 = arith.cmpi eq, %arg0, %c0_i32 : i32
    %1 = arith.extui %0 : i1 to i32
    %c0_i32_0 = arith.constant 0 : i32
    %2 = arith.cmpi ne, %1, %c0_i32_0 : i32
    scf.if %2 {
      %c0_i32_20 = arith.constant 0 : i32
      %c128_i32_21 = arith.constant 128 : i32
      %37 = arith.addi %c0_i32_20, %c128_i32_21 : i32
      %c1_i32_22 = arith.constant 1 : i32
      scf.for %arg8 = %c0_i32_20 to %37 step %c1_i32_22  : i32 {
        %c1_i32_24 = arith.constant 1 : i32
        %38 = arith.muli %arg8, %c1_i32_24 : i32
        %c0_i32_25 = arith.constant 0 : i32
        %39 = arith.addi %c0_i32_25, %38 : i32
        %c0_i32_26 = arith.constant 0 : i32
        %40 = arith.addi %c0_i32_26, %39 : i32
        %41 = arith.index_cast %40 : i32 to index
        %42 = memref.load %arg1[%41] : memref<256xi32, #tpu.memory_space<smem>>
        %c0_i32_27 = arith.constant 0 : i32
        %c0_i32_28 = arith.constant 0 : i32
        %c0_i32_29 = arith.constant 0 : i32
        %43 = tpu.memref_slice %arg2[%42, %c0_i32_29] : memref<512x128xf32, #tpu.memory_space<any>> -> memref<1x128xf32, #tpu.memory_space<any>>
        %c0_i32_30 = arith.constant 0 : i32
        %44 = tpu.memref_slice %arg6[%c0_i32_27, %39, %c0_i32_30] : memref<2x128x128xf32, #tpu.memory_space<vmem>> -> memref<1x1x128xf32, #tpu.memory_space<vmem>>
        %45 = tpu.memref_squeeze %44 : memref<1x1x128xf32, #tpu.memory_space<vmem>> -> memref<1x128xf32, #tpu.memory_space<vmem>>
        %46 = tpu.memref_slice %arg7[%c0_i32_28] : memref<2x!tpu.dma_semaphore, #tpu.memory_space<semaphore_mem>> -> memref<1x!tpu.dma_semaphore, #tpu.memory_space<semaphore_mem>>
        %47 = tpu.memref_squeeze %46 : memref<1x!tpu.dma_semaphore, #tpu.memory_space<semaphore_mem>> -> memref<!tpu.dma_semaphore, #tpu.memory_space<semaphore_mem>>
        tpu.enqueue_dma source(%43 : memref<1x128xf32, #tpu.memory_space<any>>) target(%45 : memref<1x128xf32, #tpu.memory_space<vmem>>) target_semaphore(%47 : memref<!tpu.dma_semaphore, #tpu.memory_space<semaphore_mem>>)
      }
      %c128_i32_23 = arith.constant 128 : i32
    } else {
    }
    %c1_i32 = arith.constant 1 : i32
    %3 = arith.addi %arg0, %c1_i32 : i32
    %c2_i32 = arith.constant 2 : i32
    %4 = arith.cmpi slt, %3, %c2_i32 : i32
    %5 = arith.extui %4 : i1 to i32
    %c0_i32_1 = arith.constant 0 : i32
    %6 = arith.cmpi ne, %5, %c0_i32_1 : i32
    scf.if %6 {
      %c1_i32_20 = arith.constant 1 : i32
      %37 = arith.addi %arg0, %c1_i32_20 : i32
      %c1_i32_21 = arith.constant 1 : i32
      %38 = arith.addi %arg0, %c1_i32_21 : i32
      %c2_i32_22 = arith.constant 2 : i32
      %c0_i32_23 = arith.constant 0 : i32
      %39 = arith.cmpi eq, %c2_i32_22, %c0_i32_23 : i32
      %c1_i32_24 = arith.constant 1 : i32
      %40 = arith.select %39, %c1_i32_24, %c2_i32_22 : i32
      %41 = arith.remsi %38, %40 : i32
      %c0_i32_25 = arith.constant 0 : i32
      %42 = arith.cmpi ne, %41, %c0_i32_25 : i32
      %c0_i32_26 = arith.constant 0 : i32
      %43 = arith.cmpi slt, %41, %c0_i32_26 : i32
      %c0_i32_27 = arith.constant 0 : i32
      %44 = arith.cmpi slt, %40, %c0_i32_27 : i32
      %45 = arith.xori %43, %44 : i1
      %46 = arith.andi %45, %42 : i1
      %47 = arith.addi %41, %40 : i32
      %48 = arith.select %46, %47, %41 : i32
      %c128_i32_28 = arith.constant 128 : i32
      %49 = arith.muli %37, %c128_i32_28 : i32
      %c0_i32_29 = arith.constant 0 : i32
      %c128_i32_30 = arith.constant 128 : i32
      %50 = arith.addi %c0_i32_29, %c128_i32_30 : i32
      %c1_i32_31 = arith.constant 1 : i32
      scf.for %arg8 = %c0_i32_29 to %50 step %c1_i32_31  : i32 {
        %c1_i32_33 = arith.constant 1 : i32
        %51 = arith.muli %arg8, %c1_i32_33 : i32
        %c0_i32_34 = arith.constant 0 : i32
        %52 = arith.addi %c0_i32_34, %51 : i32
        %53 = arith.addi %49, %52 : i32
        %54 = arith.index_cast %53 : i32 to index
        %55 = memref.load %arg1[%54] : memref<256xi32, #tpu.memory_space<smem>>
        %c0_i32_35 = arith.constant 0 : i32
        %56 = tpu.memref_slice %arg2[%55, %c0_i32_35] : memref<512x128xf32, #tpu.memory_space<any>> -> memref<1x128xf32, #tpu.memory_space<any>>
        %c0_i32_36 = arith.constant 0 : i32
        %57 = tpu.memref_slice %arg6[%48, %52, %c0_i32_36] : memref<2x128x128xf32, #tpu.memory_space<vmem>> -> memref<1x1x128xf32, #tpu.memory_space<vmem>>
        %58 = tpu.memref_squeeze %57 : memref<1x1x128xf32, #tpu.memory_space<vmem>> -> memref<1x128xf32, #tpu.memory_space<vmem>>
        %59 = tpu.memref_slice %arg7[%48] : memref<2x!tpu.dma_semaphore, #tpu.memory_space<semaphore_mem>> -> memref<1x!tpu.dma_semaphore, #tpu.memory_space<semaphore_mem>>
        %60 = tpu.memref_squeeze %59 : memref<1x!tpu.dma_semaphore, #tpu.memory_space<semaphore_mem>> -> memref<!tpu.dma_semaphore, #tpu.memory_space<semaphore_mem>>
        tpu.enqueue_dma source(%56 : memref<1x128xf32, #tpu.memory_space<any>>) target(%58 : memref<1x128xf32, #tpu.memory_space<vmem>>) target_semaphore(%60 : memref<!tpu.dma_semaphore, #tpu.memory_space<semaphore_mem>>)
      }
      %c128_i32_32 = arith.constant 128 : i32
    } else {
    }
    %c2_i32_2 = arith.constant 2 : i32
    %c0_i32_3 = arith.constant 0 : i32
    %7 = arith.cmpi eq, %c2_i32_2, %c0_i32_3 : i32
    %c1_i32_4 = arith.constant 1 : i32
    %8 = arith.select %7, %c1_i32_4, %c2_i32_2 : i32
    %9 = arith.remsi %arg0, %8 : i32
    %c0_i32_5 = arith.constant 0 : i32
    %10 = arith.cmpi ne, %9, %c0_i32_5 : i32
    %c0_i32_6 = arith.constant 0 : i32
    %11 = arith.cmpi slt, %9, %c0_i32_6 : i32
    %c0_i32_7 = arith.constant 0 : i32
    %12 = arith.cmpi slt, %8, %c0_i32_7 : i32
    %13 = arith.xori %11, %12 : i1
    %14 = arith.andi %13, %10 : i1
    %15 = arith.addi %9, %8 : i32
    %16 = arith.select %14, %15, %9 : i32
    %c0_i32_8 = arith.constant 0 : i32
    %c128_i32 = arith.constant 128 : i32
    %17 = arith.addi %c0_i32_8, %c128_i32 : i32
    %c1_i32_9 = arith.constant 1 : i32
    scf.for %arg8 = %c0_i32_8 to %17 step %c1_i32_9  : i32 {
      %c1_i32_20 = arith.constant 1 : i32
      %37 = arith.muli %arg8, %c1_i32_20 : i32
      %c0_i32_21 = arith.constant 0 : i32
      %38 = arith.addi %c0_i32_21, %37 : i32
      %c0_i32_22 = arith.constant 0 : i32
      %c0_i32_23 = arith.constant 0 : i32
      %39 = tpu.memref_slice %arg2[%c0_i32_22, %c0_i32_23] : memref<512x128xf32, #tpu.memory_space<any>> -> memref<1x128xf32, #tpu.memory_space<any>>
      %c0_i32_24 = arith.constant 0 : i32
      %40 = tpu.memref_slice %arg6[%16, %38, %c0_i32_24] : memref<2x128x128xf32, #tpu.memory_space<vmem>> -> memref<1x1x128xf32, #tpu.memory_space<vmem>>
      %41 = tpu.memref_squeeze %40 : memref<1x1x128xf32, #tpu.memory_space<vmem>> -> memref<1x128xf32, #tpu.memory_space<vmem>>
      %42 = tpu.memref_slice %arg7[%16] : memref<2x!tpu.dma_semaphore, #tpu.memory_space<semaphore_mem>> -> memref<1x!tpu.dma_semaphore, #tpu.memory_space<semaphore_mem>>
      %43 = tpu.memref_squeeze %42 : memref<1x!tpu.dma_semaphore, #tpu.memory_space<semaphore_mem>> -> memref<!tpu.dma_semaphore, #tpu.memory_space<semaphore_mem>>
      tpu.wait_dma2 semaphore(%43 : memref<!tpu.dma_semaphore, #tpu.memory_space<semaphore_mem>>) src(%39 : memref<1x128xf32, #tpu.memory_space<any>>) dst(%41 : memref<1x128xf32, #tpu.memory_space<vmem>>)
    }
    %c128_i32_10 = arith.constant 128 : i32
    %18 = arith.index_cast %16 : i32 to index
    %c0 = arith.constant 0 : index
    %c0_11 = arith.constant 0 : index
    %19 = vector.load %arg6[%18, %c0, %c0_11] : memref<2x128x128xf32, #tpu.memory_space<vmem>>, vector<1x128x128xf32>
    %20 = vector.shape_cast %19 : vector<1x128x128xf32> to vector<128x128xf32>
    %c0_12 = arith.constant 0 : index
    %c0_13 = arith.constant 0 : index
    %21 = vector.load %arg3[%c0_12, %c0_13] : memref<128x128xf32, #tpu.memory_space<vmem>>, vector<128x128xf32>
    %cst = arith.constant dense<0.000000e+00> : vector<128x128xf32>
    %22 = tpu.matmul %20, %21, %cst {dimension_numbers = #tpu.dot_dimension_numbers<[1], [0], [0], [1], [0, 0, 1, 1], [], []>} : vector<128x128xf32>, vector<128x128xf32>, vector<128x128xf32> -> vector<128x128xf32>
    %c0_14 = arith.constant 0 : index
    %c0_15 = arith.constant 0 : index
    %23 = vector.load %arg4[%c0_14, %c0_15] : memref<1x128xf32, #tpu.memory_space<vmem>>, vector<1x128xf32>
    %24 = vector.broadcast %23 : vector<1x128xf32> to vector<128x128xf32>
    %25 = arith.addf %22, %24 : vector<128x128xf32>
    %cst_16 = arith.constant dense<0xFF800000> : vector<128xf32>
    %26 = vector.multi_reduction <maximumf>, %25, %cst_16 [1] : vector<128x128xf32> to vector<128xf32>
    %27 = vector.shape_cast %26 : vector<128xf32> to vector<128x1xf32>
    %28 = vector.broadcast %27 : vector<128x1xf32> to vector<128x128xf32>
    %29 = arith.subf %25, %28 : vector<128x128xf32>
    %30 = math.exp %29 : vector<128x128xf32>
    %cst_17 = arith.constant dense<0.000000e+00> : vector<128xf32>
    %31 = vector.multi_reduction <add>, %30, %cst_17 [1] : vector<128x128xf32> to vector<128xf32>
    %32 = vector.shape_cast %31 : vector<128xf32> to vector<128x1xf32>
    %33 = math.log %32 : vector<128x1xf32>
    %34 = vector.broadcast %33 : vector<128x1xf32> to vector<128x128xf32>
    %35 = arith.subf %29, %34 : vector<128x128xf32>
    %c0_18 = arith.constant 0 : index
    %c0_19 = arith.constant 0 : index
    %36 = vector.load %arg5[%c0_18, %c0_19] : memref<128x128xf32, #tpu.memory_space<vmem>>, vector<128x128xf32>
    tpu.vector_store %arg5[%c0_18, %c0_19], %35 {strides = array<i32>} : memref<128x128xf32, #tpu.memory_space<vmem>>, vector<128x128xf32>,
    return
  }
  func.func @transform_1(%arg0: i32, %arg1: memref<256xi32, #tpu.memory_space<smem>>) -> (i32, i32) {
    %c0_i32 = arith.constant 0 : i32
    %c0_i32_0 = arith.constant 0 : i32
    %c0_i32_1 = arith.constant 0 : i32
    return %c0_i32, %c0_i32_0 : i32, i32
  }
  func.func @transform_2(%arg0: i32, %arg1: memref<256xi32, #tpu.memory_space<smem>>) -> (i32, i32) {
    %c0_i32 = arith.constant 0 : i32
    %c0_i32_0 = arith.constant 0 : i32
    %c0_i32_1 = arith.constant 0 : i32
    return %c0_i32, %c0_i32_0 : i32, i32
  }
  func.func @transform_3(%arg0: i32, %arg1: memref<256xi32, #tpu.memory_space<smem>>) -> (i32, i32) {
    %c0_i32 = arith.constant 0 : i32
    %c0_i32_0 = arith.constant 0 : i32
    return %arg0, %c0_i32 : i32, i32
  }
}

</mosaic_0001>

<bundles_post_ra>
// kernel: skip_gram_forward.1
= control target key start
LH: loop header
LB: loop body
LE: loop exit
PB: predicated region body
PF: predicated region fallthrough
CT: control target
= control target key end

     0   :  { %s1321_s0 = inlined_call_operand.vmem [shape: s32[256], index: 0, kind: input, shape index: {}]   ;;  %s1322_s1 = inlined_call_operand.hbm [shape: f32[512,128], index: 1, kind: input, shape index: {}]   ;;  %s1323_s2 = inlined_call_operand.hbm [shape: f32[128,128], index: 2, kind: input, shape index: {}]   ;;  %s1324_s3 = inlined_call_operand.vmem [shape: f32[1,128], index: 3, kind: input, shape index: {}]   ;;  %s1325_s4 = inlined_call_operand.vmem [shape: f32[256,128], index: 4, kind: output, shape index: {}]  }
   0x1   :  { %s9_s17 = sshll.u32 %s1321_s0, 4  ;;  %s10_s17 = int_to_ptr.vmem [resolvable:$true] %s9_s17 }
   0x2   :  { %s954_s18 = scalar_lea.vmem %s10_s17, 32  ;;  %p959_p1 = scmp.lt.s32.totalorder %s10_s17, %s10_s17 }
   0x3   :  { %p955_p0 = scmp.ne.s32.totalorder %s10_s17, %s954_s18  ;;  %p960_p2 = scmp.lt.s32.totalorder %s954_s18, %s954_s18 }
   0x5   :  { %p961_p3 = por %p960_p2, %p959_p1 }
   0x7   :  { %p962_p4 = pnand %p961_p3, %p955_p0 }
   0x9   :  { %965 = shalt.err (!%p962_p4)  }
   0xa   :  { %s1076_s19 = smov [#allocation5]  }
   0xb   :  { %12 = dma.vmem_to_smem %s10_s17, 32, %s1076_s19, [#allocation4] }
   0xc   :  { %1052 = dma.done.wait [#allocation4], 32 }
   0xd   :  { %1053 = vsyncadd [#allocation4], 4294967264 }
   0xe   :  { %14 = sfence }
   0xf   :  { %15 = vsyncpa [#allocation7], 0  ;;  %s1110_s20 = smov 0  }
  0x10 LB: > { %s1116_s0 = sadd.s32 4294967295, %s1062_s20   ;;  %p698_p5 = scmp.ge.s32.totalorder %s1062_s20, 1  ;;  %s1062_s20 = sphi %s1110_s20, %s21_s20  }
  0x11   : > { %p94_p6 = scmp.lt.s32.totalorder %s1062_s20, 3  ;;  %s1077_s21 = smov [#allocation6]  }
  0x12   : > { %s106_s22 = sshll.u32 %s1077_s21, 4  ;;  %p852_p9 = scmp.eq.s32.totalorder %s1116_s0, 0  ;;  %s107_s22 = int_to_ptr.vmem [resolvable:$true] %s106_s22 }
  0x13   : > { %p1121_p8 = pnand %p698_p5, %p94_p6  ;;  %s977_s24 = scalar_lea.vmem %s107_s22, 2048 }
  0x14   : > { %p978_p13 = scmp.ne.s32.totalorder %s107_s22, %s977_s24  ;;  %p985_p2 = scmp.lt.s32.totalorder %s107_s22, %s107_s22 }
  0x15   : > { %p848_p10 = pneg %p1121_p8  ;;  %p986_p3 = scmp.lt.s32.totalorder %s977_s24, %s977_s24 }
  0x17   : > { %p849_p11 = pnand %p852_p9, %p848_p10  ;;  %p987_p4 = por %p986_p3, %p985_p2 }
  0x19   : > { %p968_p12 = pneg %p849_p11 }
  0x1b   : > { %p980_p0 = pnand %p978_p13, %p968_p12 }
  0x1d   : > { %p981_p1 = pneg %p980_p0 }
  0x1f   : > { %p988_p7 = pnand %p987_p4, %p981_p1 }
  0x21   : > { %991 = shalt.err (!%p988_p7)
}
  0x22   : > { %s1078_s25 = smov 128   ;;  %s1079_s26 = smov 8  }
  0x23   : > { %851 = dma.hbm_to_vmem [thread:$0]  (!%p849_p11), %s1323_s2, 2048, %s107_s22, [#allocation7], %s1078_s25, %s1078_s25, %s1079_s26  }
  0x24   : > { %125 = sbr.rel (%p1121_p8) target bundleno = 719 (0x2cf), region = 28 }
  0x29   : > { %1055 = dma.done.wait (%p852_p9), [#allocation7], 2048  }
  0x2a   : > { %1057 = vsyncadd (%p852_p9), [#allocation7], 4294965248  ;;  %s702_s29 = sshll.u32 %s1116_s0, 4  ;;  %p1327_p6 = scmp.ne.s32.totalorder %s1116_s0, 0 }
  0x2b   : > { %p143_p5 = scmp.lt.s32.totalorder %s702_s29, 31  ;;  %s1147_s8 = smov (!%p1327_p6), 0  }
  0x2c   : > { %151 = sbr.rel (%p1327_p6) target bundleno = 84 (0x54), region = 36 }
  0x2d   : > { %s1329_s29 = smov (!%p143_p5, %s702_s29), 31 }
  0x2e   : > { %s703_s30 = sshll.u32 %s1329_s29, 3 }
  0x2f   : > { %s1143_s7 = scalar_lea.vmem %s1325_s4, %s703_s30 }
  0x31 LB: >> { %s158_s9 = sld [smem:[#allocation5 + %s1066_s8]]  ;;  %s161_s10 = scalar_lea.vmem [#allocation2], %s1066_s8  ;;  %s1066_s8 = sphi %s1147_s8, %s157_s8  }
  0x32   : >> { %s169_s11 = sshll.u32 %s161_s10, 4  ;;  %s994_s19 = scalar_lea.hbm %s1322_s1, 8192  ;;  %s170_s11 = int_to_ptr.vmem [resolvable:$true] %s169_s11 }
  0x37   : >> { %s705_s12 = sshll.u32 %s158_s9, 4 }
  0x38   : >> { %s160_s15 = scalar_lea.hbm %s1322_s1, %s705_s12 }
  0x39   : >> { %s992_s16 = scalar_lea.hbm %s160_s15, 16  ;;  %p995_p8 = scmp.lt.s32.totalorder %s160_s15, %s1322_s1 }
  0x3a   : >> { %p993_p7 = scmp.ne.s32.totalorder %s160_s15, %s992_s16  ;;  %p996_p9 = scmp.lt.s32.totalorder %s994_s19, %s992_s16 }
  0x3c   : >> { %p997_p10 = por %p996_p9, %p995_p8 }
  0x3e   : >> { %p998_p11 = pnand %p997_p10, %p993_p7 }
  0x40   : >> { %1001 = shalt.err (!%p998_p11)  }
  0x41   : >> { %s1002_s23 = scalar_lea.vmem %s170_s11, 16  ;;  %s1080_s24 = smov [#allocation2]  }
  0x42   : >> { %p1003_p12 = scmp.ne.s32.totalorder %s170_s11, %s1002_s23  ;;  %s1004_s25 = sshll.u32 %s1080_s24, 4  ;;  %s1005_s25 = int_to_ptr.vmem [resolvable:$false] %s1004_s25 }
  0x43   : >> { %s1006_s26 = scalar_lea.vmem %s1005_s25, 4096  ;;  %p1007_p13 = scmp.lt.s32.totalorder %s170_s11, %s1005_s25 }
  0x44   : >> { %p1008_p0 = scmp.lt.s32.totalorder %s1006_s26, %s1002_s23 }
  0x46   : >> { %p1009_p1 = por %p1008_p0, %p1007_p13 }
  0x48   : >> { %p1010_p2 = pnand %p1009_p1, %p1003_p12 }
  0x4a   : >> { %1013 = shalt.err (!%p1010_p2)  }
  0x4b   : >> { %172 = dma.hbm_to_vmem [thread:$0]  %s160_s15, 16, %s170_s11, [#allocation3] }
  0x4c   : >> { %s157_s8 = sadd.s32 1, %s1066_s8  }
  0x4d   : >> { %p154_p3 = scmp.ge.s32.totalorder %s157_s8, 128  }
  0x4f   : > { %156 = sbr.rel (!%p154_p3) target bundleno = 49 (0x31), region = 105 }
  0x54 PF: > { %s173_s27 = sadd.s32 1, %s1116_s0 }
  0x55   : > { %p706_p4 = scmp.ge.s32.totalorder %s173_s27, 2 }
  0x56   : > { %p178_p5 = scmp.lt.s32.totalorder (!%p706_p4), %s173_s27, 0  ;;  %s179_s28 = ssub.s32 (!%p706_p4), 0, %s173_s27 }
  0x57   : > { %177 = sbr.rel (%p706_p4) target bundleno = 132 (0x84), region = 51  ;;  %s707_s29 = smin.u32 (!%p706_p4), %s179_s28, %s173_s27 }
  0x58   : > { %s722_s30 = sshll.u32 (!%p706_p4), %s1116_s0, 7  ;;  %s181_s5 = sand.u32 (!%p706_p4), 1, %s707_s29  }
  0x59   : > { %s1168_s6 = sadd.s32 (!%p706_p4), 128, %s722_s30  ;;  %s182_s9 = ssub.s32 (!%p706_p4), 0, %s181_s5 }
  0x5a   : > { %s1172_s8 = smov (!%p706_p4), 0  }
  0x5c   : > { %s1331_s9 = smov (!%p178_p5, %s182_s9), %s181_s5 }
  0x5d   : > { %p709_p6 = scmp.lt.s32.totalorder %s1331_s9, 0  ;;  %s188_s10 = sadd.s32 2, %s1331_s9 }
  0x5f   : > { %s1333_s10 = smov (!%p709_p6, %s188_s10), %s1331_s9 }
  0x60 LB: >> { %s712_s11 = sshll.u32 %s1333_s10, 7  ;;  %s197_s12 = sadd.s32 %s1070_s8, %s1168_s6  ;;  %s1070_s8 = sphi %s1172_s8, %s196_s8  }
  0x61   : >> { %s202_s13 = sadd.s32 %s1070_s8, %s712_s11  ;;  %s198_s14 = sld [smem:[#allocation5 + %s197_s12]] }
  0x62   : >> { %s203_s15 = scalar_lea.vmem [#allocation2], %s202_s13  ;;  %s204_s22 = scalar_lea.sflag [#allocation3], %s1333_s10 }
  0x63   : >> { %s212_s16 = sshll.u32 %s203_s15, 4  ;;  %s1016_s26 = scalar_lea.hbm %s1322_s1, 8192  ;;  %s213_s16 = int_to_ptr.vmem [resolvable:$true] %s212_s16 }
  0x67   : >> { %s711_s17 = sshll.u32 %s198_s14, 4 }
  0x68   : >> { %s200_s21 = scalar_lea.hbm %s1322_s1, %s711_s17 }
  0x69   : >> { %s1014_s23 = scalar_lea.hbm %s200_s21, 16  ;;  %p1017_p8 = scmp.lt.s32.totalorder %s200_s21, %s1322_s1 }
  0x6a   : >> { %p1015_p7 = scmp.ne.s32.totalorder %s200_s21, %s1014_s23  ;;  %p1018_p9 = scmp.lt.s32.totalorder %s1016_s26, %s1014_s23 }
  0x6c   : >> { %p1019_p10 = por %p1018_p9, %p1017_p8 }
  0x6e   : >> { %p1020_p11 = pnand %p1019_p10, %p1015_p7 }
  0x70   : >> { %1023 = shalt.err (!%p1020_p11)  }
  0x71   : >> { %s1024_s29 = scalar_lea.vmem %s213_s16, 16  ;;  %s1081_s30 = smov [#allocation2]  }
  0x72   : >> { %p1025_p12 = scmp.ne.s32.totalorder %s213_s16, %s1024_s29  ;;  %s1026_s5 = sshll.u32 %s1081_s30, 4  ;;  %s1027_s5 = int_to_ptr.vmem [resolvable:$false] %s1026_s5 }
  0x73   : >> { %s1028_s9 = scalar_lea.vmem %s1027_s5, 4096  ;;  %p1029_p13 = scmp.lt.s32.totalorder %s213_s16, %s1027_s5 }
  0x74   : >> { %p1030_p0 = scmp.lt.s32.totalorder %s1028_s9, %s1024_s29 }
  0x76   : >> { %p1031_p1 = por %p1030_p0, %p1029_p13 }
  0x78   : >> { %p1032_p2 = pnand %p1031_p1, %p1025_p12 }
  0x7a   : >> { %1035 = shalt.err (!%p1032_p2)  }
  0x7b   : >> { %215 = dma.hbm_to_vmem [thread:$0]  %s200_s21, 16, %s213_s16, %s204_s22 }
  0x7c   : >> { %s196_s8 = sadd.s32 1, %s1070_s8  }
  0x7d   : >> { %p193_p3 = scmp.ge.s32.totalorder %s196_s8, 128  }
  0x7f   : > { %195 = sbr.rel (!%p193_p3) target bundleno = 96 (0x60), region = 116 }
  0x84 PF: > { %p216_p4 = scmp.lt.s32.totalorder %s1116_s0, 0  ;;  %s217_s11 = ssub.s32 0, %s1116_s0 }
  0x85   : > { %s713_s12 = smin.u32 %s1116_s0, %s217_s11  ;;  %s1072_s16 = smov 0  }
  0x86   : > { %s219_s13 = sand.u32 1, %s713_s12  }
  0x87   : > { %s220_s14 = ssub.s32 0, %s219_s13 }
  0x88   : > { %s1335_s14 = smov (!%p216_p4, %s220_s14), %s219_s13 }
  0x89   : > { %p715_p5 = scmp.lt.s32.totalorder %s1335_s14, 0  ;;  %s226_s15 = sadd.s32 2, %s1335_s14 }
  0x8b   : > { %s1337_s15 = smov (!%p715_p5, %s226_s15), %s1335_s14 }
  0x8c LB: >> { %s234_s8 = scalar_lea.sflag [#allocation3], %s1337_s15  ;;  %s1074_s16 = sphi %s1072_s16, %s233_s16  }
  0x8d   : >> { %1058 = dma.done.wait %s234_s8, 16 }
  0x8e   : >> { %1059 = vsyncadd %s234_s8, 4294967280  ;;  %s233_s16 = sadd.s32 1, %s1074_s16  }
  0x8f   : >> { %p230_p6 = scmp.ge.s32.totalorder %s233_s16, 128  }
  0x90   : > { %v271_v0 = vld [vmem:[#allocation6 + $0x78] sm:$0xff] (%p230_p6)  ;;  %v270_v1 = vld [vmem:[#allocation6 + $0x70] sm:$0xff] (%p230_p6)  ;;  %v269_v2 = vld [vmem:[#allocation6 + $0x68] sm:$0xff] (%p230_p6)  ;;  %s716_s0 = sshll.u32 (%p230_p6), %s1337_s15, 7 }
  0x91   : > { %232 = sbr.rel (!%p230_p6) target bundleno = 140 (0x8c), region = 127  ;;  %756 = vmatprep.subr.mxu0 (%p230_p6), %v271_v0  ;;  %812 = vmatprep.subr.mxu1 (%p230_p6), %v271_v0  ;;  %v268_v3 = vld [vmem:[#allocation6 + $0x60] sm:$0xff] (%p230_p6)  ;;  %v267_v4 = vld [vmem:[#allocation6 + $0x58] sm:$0xff] (%p230_p6)  ;;  %v266_v5 = vld [vmem:[#allocation6 + $0x50] sm:$0xff] (%p230_p6)  ;;  %s1201_s6 = scalar_lea.vmem (%p230_p6), [#allocation2], %s716_s0 }
  0x92   : > { %757 = vmatpush3.msra.mxu0 (%p230_p6), %v271_v0  ;;  %828 = vmatpush3.msra.mxu1 (%p230_p6), %v271_v0  ;;  %v265_v6 = vld [vmem:[#allocation6 + $0x48] sm:$0xff] (%p230_p6)  ;;  %v264_v7 = vld [vmem:[#allocation6 + $0x40] sm:$0xff] (%p230_p6)  ;;  %v263_v8 = vld [vmem:[#allocation6 + $0x38] sm:$0xff] (%p230_p6) }
  0x93   : > { %758 = vmatprep.subr.mxu0 (%p230_p6), %v270_v1  ;;  %813 = vmatprep.subr.mxu1 (%p230_p6), %v270_v1  ;;  %v262_v9 = vld [vmem:[#allocation6 + $0x30] sm:$0xff] (%p230_p6)  ;;  %v261_v10 = vld [vmem:[#allocation6 + $0x28] sm:$0xff] (%p230_p6)  ;;  %v260_v11 = vld [vmem:[#allocation6 + $0x20] sm:$0xff] (%p230_p6) }
  0x94   : > { %759 = vmatpush3.msra.mxu0 (%p230_p6), %v270_v1  ;;  %829 = vmatpush3.msra.mxu1 (%p230_p6), %v270_v1  ;;  %v259_v12 = vld [vmem:[#allocation6 + $0x18] sm:$0xff] (%p230_p6)  ;;  %v258_v13 = vld [vmem:[#allocation6 + $0x10] sm:$0xff] (%p230_p6)  ;;  %v257_v14 = vld [vmem:[#allocation6 + $0x8] sm:$0xff] (%p230_p6) }
  0x95   : > { %760 = vmatprep.subr.mxu0 (%p230_p6), %v269_v2  ;;  %814 = vmatprep.subr.mxu1 (%p230_p6), %v269_v2  ;;  %v256_v15 = vld [vmem:[#allocation6] sm:$0xff] (%p230_p6)  ;;  %v241_v18 = vld [vmem:[%s1201_s6 + $0x8] sm:$0xff] (%p230_p6)  ;;  %v242_v20 = vld [vmem:[%s1201_s6 + $0x10] sm:$0xff] (%p230_p6) }
  0x96   : > { %761 = vmatpush3.msra.mxu0 %v269_v2  ;;  %830 = vmatpush3.msra.mxu1 %v269_v2  ;;  %v240_v16 = vld [vmem:[%s1201_s6] sm:$0xff]  ;;  %v249_v19 = vld [vmem:[%s1201_s6 + $0x48] sm:$0xff]  ;;  %v250_v21 = vld [vmem:[%s1201_s6 + $0x50] sm:$0xff] }
  0x97   : > { %762 = vmatprep.subr.mxu0 %v268_v3  ;;  %815 = vmatprep.subr.mxu1 %v268_v3  ;;  %v248_v17 = vld [vmem:[%s1201_s6 + $0x40] sm:$0xff]  ;;  %v243_v22 = vld [vmem:[%s1201_s6 + $0x18] sm:$0xff]  ;;  %v245_v26 = vld [vmem:[%s1201_s6 + $0x28] sm:$0xff] }
  0x98   : > { %763 = vmatpush3.msra.mxu0 %v268_v3  ;;  %831 = vmatpush3.msra.mxu1 %v268_v3  ;;  %v251_v23 = vld [vmem:[%s1201_s6 + $0x58] sm:$0xff]  ;;  %v244_v24 = vld [vmem:[%s1201_s6 + $0x20] sm:$0xff]  ;;  %v253_v27 = vld [vmem:[%s1201_s6 + $0x68] sm:$0xff] }
  0x99   : > { %764 = vmatprep.subr.mxu0 %v267_v4  ;;  %816 = vmatprep.subr.mxu1 %v267_v4  ;;  %v252_v25 = vld [vmem:[%s1201_s6 + $0x60] sm:$0xff]  ;;  %v246_v28 = vld [vmem:[%s1201_s6 + $0x30] sm:$0xff]  ;;  %v247_v30 = vld [vmem:[%s1201_s6 + $0x38] sm:$0xff] }
  0x9a   : > { %765 = vmatpush3.msra.mxu0 %v267_v4  ;;  %832 = vmatpush3.msra.mxu1 %v267_v4  ;;  %v254_v29 = vld [vmem:[%s1201_s6 + $0x70] sm:$0xff]  ;;  %v255_v31 = vld [vmem:[%s1201_s6 + $0x78] sm:$0xff]  ;;  %v717_v32 = vld [vmem:[%s1324_s3] ss:$0 sm:$0xff] }
  0x9b   : > { %766 = vmatprep.subr.mxu0 %v266_v5  ;;  %817 = vmatprep.subr.mxu1 %v266_v5 }
  0x9c   : > { %767 = vmatpush3.msra.mxu0 %v266_v5  ;;  %833 = vmatpush3.msra.mxu1 %v266_v5 }
  0x9d   : > { %768 = vmatprep.subr.mxu0 %v265_v6  ;;  %818 = vmatprep.subr.mxu1 %v265_v6 }
  0x9e   : > { %769 = vmatpush3.msra.mxu0 %v265_v6  ;;  %834 = vmatpush3.msra.mxu1 %v265_v6 }
  0x9f   : > { %770 = vmatprep.subr.mxu0 %v264_v7  ;;  %819 = vmatprep.subr.mxu1 %v264_v7 }
  0xa0   : > { %771 = vmatpush3.msra.mxu0 %v264_v7  ;;  %835 = vmatpush3.msra.mxu1 %v264_v7 }
  0xa1   : > { %772 = vmatprep.subr.mxu0 %v263_v8  ;;  %820 = vmatprep.subr.mxu1 %v263_v8 }
  0xa2   : > { %773 = vmatpush3.msra.mxu0 %v263_v8  ;;  %836 = vmatpush3.msra.mxu1 %v263_v8 }
  0xa3   : > { %774 = vmatprep.subr.mxu0 %v262_v9  ;;  %821 = vmatprep.subr.mxu1 %v262_v9 }
  0xa4   : > { %775 = vmatpush3.msra.mxu0 %v262_v9  ;;  %837 = vmatpush3.msra.mxu1 %v262_v9 }
  0xa5   : > { %776 = vmatprep.subr.mxu0 %v261_v10  ;;  %822 = vmatprep.subr.mxu1 %v261_v10 }
  0xa6   : > { %777 = vmatpush3.msra.mxu0 %v261_v10  ;;  %838 = vmatpush3.msra.mxu1 %v261_v10 }
  0xa7   : > { %778 = vmatprep.subr.mxu0 %v260_v11  ;;  %823 = vmatprep.subr.mxu1 %v260_v11 }
  0xa8   : > { %779 = vmatpush3.msra.mxu0 %v260_v11  ;;  %839 = vmatpush3.msra.mxu1 %v260_v11 }
  0xa9   : > { %780 = vmatprep.subr.mxu0 %v259_v12  ;;  %824 = vmatprep.subr.mxu1 %v259_v12 }
  0xaa   : > { %781 = vmatpush3.msra.mxu0 %v259_v12  ;;  %840 = vmatpush3.msra.mxu1 %v259_v12 }
  0xab   : > { %782 = vmatprep.subr.mxu0 %v258_v13  ;;  %825 = vmatprep.subr.mxu1 %v258_v13 }
  0xac   : > { %783 = vmatpush3.msra.mxu0 %v258_v13  ;;  %841 = vmatpush3.msra.mxu1 %v258_v13 }
  0xad   : > { %784 = vmatprep.subr.mxu0 %v257_v14  ;;  %826 = vmatprep.subr.mxu1 %v257_v14 }
  0xae   : > { %785 = vmatpush3.msra.mxu0 %v257_v14  ;;  %842 = vmatpush3.msra.mxu1 %v257_v14 }
  0xaf   : > { %786 = vmatprep.subr.mxu0 %v256_v15  ;;  %827 = vmatprep.subr.mxu1 %v256_v15 }
  0xb0   : > { %787 = vmatpush3.msra.mxu0 %v256_v15  ;;  %843 = vmatpush3.msra.mxu1 %v256_v15 }
  0xb1   : > { %788 = vmatprep.mubr.f32.mxu0 %v240_v16  ;;  %800 = vmatprep.mubr.f32.mxu1 %v248_v17 }
  0xb2   : > { %789 = vmatmul.mubr.f32.vlgmr.msra.gmra.mxu0 %v241_v18  ;;  %801 = vmatmul.mubr.f32.vlgmr.msra.gmra.mxu1 %v249_v19 }
  0xb3   : > { %791 = vmatprep.mubr.f32.mxu0 %v242_v20  ;;  %803 = vmatprep.mubr.f32.mxu1 %v250_v21 }
  0xb6   : > { %792 = vmatmul.mubr.f32.gmra.mxu0 %v243_v22  ;;  %804 = vmatmul.mubr.f32.gmra.mxu1 %v251_v23 }
  0xb7   : > { %794 = vmatprep.mubr.f32.mxu0 %v244_v24  ;;  %806 = vmatprep.mubr.f32.mxu1 %v252_v25 }
  0xba   : > { %795 = vmatmul.mubr.f32.gmra.mxu0 %v245_v26  ;;  %807 = vmatmul.mubr.f32.gmra.mxu1 %v253_v27 }
  0xbb   : > { %797 = vmatprep.mubr.f32.mxu0 %v246_v28  ;;  %809 = vmatprep.mubr.f32.mxu1 %v254_v29 }
  0xbe   : > { %798 = vmatmul.mubr.f32.gmra.mxu0 %v247_v30  ;;  %810 = vmatmul.mubr.f32.gmra.mxu1 %v255_v31 }
 0x172   : > { %v790_v33 = vpop.f32.mrf.mxu0  ;;  %v802_v34 = vpop.f32.mrf.mxu1 }
 0x173   : > { %v351_v35 = vadd.f32 %v790_v33, %v717_v32  ;;  %v391_v36 = vadd.f32 %v802_v34, %v717_v32 }
 0x174   : > { %v345_v37 = vpop.f32.mrf.mxu0  ;;  %v385_v38 = vpop.f32.mrf.mxu1 }
 0x175   : > { %442 = vmax.xlane.f32.xlu1 %v391_v36  ;;  %426 = vmax.xlane.f32.xlu0 %v351_v35  ;;  %v346_v40 = vadd.f32 %v717_v32, %v345_v37  ;;  %v386_v46 = vadd.f32 %v717_v32, %v385_v38 }
 0x176   : > { %v793_v39 = vpop.f32.mrf.mxu0  ;;  %v805_v43 = vpop.f32.mrf.mxu1 }
 0x177   : > { %v361_v41 = vadd.f32 %v793_v39, %v717_v32  ;;  %v401_v44 = vadd.f32 %v805_v43, %v717_v32 }
 0x178   : > { %v355_v42 = vpop.f32.mrf.mxu0  ;;  %v395_v47 = vpop.f32.mrf.mxu1 }
 0x179   : > { %430 = vmax.xlane.f32.xlu1 %v361_v41  ;;  %424 = vmax.xlane.f32.xlu0 %v346_v40  ;;  %v356_v50 = vadd.f32 %v717_v32, %v355_v42  ;;  %v396_v51 = vadd.f32 %v717_v32, %v395_v47 }
 0x17a   : > { %v796_v45 = vpop.f32.mrf.mxu0  ;;  %v808_v49 = vpop.f32.mrf.mxu1 }
 0x17b   : > { %v371_v52 = vadd.f32 %v796_v45, %v717_v32  ;;  %v411_v56 = vadd.f32 %v808_v49, %v717_v32 }
 0x17c   : > { %v365_v48 = vpop.f32.mrf.mxu0  ;;  %v405_v54 = vpop.f32.mrf.mxu1 }
 0x17d   : > { %446 = vmax.xlane.f32.xlu1 %v401_v44  ;;  %440 = vmax.xlane.f32.xlu0 %v386_v46  ;;  %v366_v53 = vadd.f32 %v717_v32, %v365_v48  ;;  %v406_v57 = vadd.f32 %v717_v32, %v405_v54 }
 0x17e   : > { %v799_v55 = vpop.f32.mrf.mxu0  ;;  %v811_v59 = vpop.f32.mrf.mxu1 }
 0x17f   : > { %v1222_v60 = vadd.f32 %v799_v55, %v717_v32  ;;  %v1226_v63 = vadd.f32 %v811_v59, %v717_v32 }
 0x180   : > { %v375_v58 = vpop.f32.mrf.mxu0  ;;  %v415_v62 = vpop.f32.mrf.mxu1 }
 0x181   : > { %428 = vmax.xlane.f32.xlu1 %v356_v50  ;;  %444 = vmax.xlane.f32.xlu0 %v396_v51  ;;  %v1224_v61 = vadd.f32 %v717_v32, %v375_v58  ;;  %v1230_v0 = vadd.f32 %v717_v32, %v415_v62 }
 0x185   : > { %434 = vmax.xlane.f32.xlu1 %v371_v52  ;;  %432 = vmax.xlane.f32.xlu0 %v366_v53 }
 0x189   : > { %450 = vmax.xlane.f32.xlu1 %v411_v56  ;;  %448 = vmax.xlane.f32.xlu0 %v406_v57 }
 0x18d   : > { %438 = vmax.xlane.f32.xlu1 %v1222_v60  ;;  %436 = vmax.xlane.f32.xlu0 %v1224_v61 }
 0x191   : > { %454 = vmax.xlane.f32.xlu1 %v1226_v63  ;;  %452 = vmax.xlane.f32.xlu0 %v1230_v0 }
 0x1fe   : > { %v443_v1 = vpop.xlane.xlu1 %442  ;;  %v427_v2 = vpop.xlane.xlu0 %426 }
 0x1ff   : > { %v1234_v3 = vsub.f32 %v391_v36, %v443_v1  ;;  %v1236_v4 = vsub.f32 %v351_v35, %v427_v2 }
 0x201   : > { %v474_v5 = vmul.f32 1.442695, %v1236_v4  ;;  %v490_v8 = vmul.f32 1.442695, %v1234_v3 }
 0x202   : > { %v431_v6 = vpop.xlane.xlu1 %430  ;;  %v425_v7 = vpop.xlane.xlu0 %424 }
 0x203   : > { %v1240_v9 = vsub.f32 %v361_v41, %v431_v6  ;;  %v1242_v10 = vsub.f32 %v346_v40, %v425_v7  ;;  %890 = vpow2.f32 %v474_v5 }
 0x204   : > { %892 = vpow2.f32 %v490_v8 }
 0x205   : > { %v472_v11 = vmul.f32 1.442695, %v1242_v10  ;;  %v478_v14 = vmul.f32 1.442695, %v1240_v9 }
 0x206   : > { %v447_v12 = vpop.xlane.xlu1 %446  ;;  %v441_v13 = vpop.xlane.xlu0 %440 }
 0x207   : > { %v1246_v15 = vsub.f32 %v386_v46, %v441_v13  ;;  %894 = vpow2.f32 %v472_v11  ;;  %v1248_v16 = vsub.f32 %v401_v44, %v447_v12 }
 0x208   : > { %896 = vpow2.f32 %v478_v14 }
 0x209   : > { %v488_v17 = vmul.f32 1.442695, %v1246_v15  ;;  %v494_v21 = vmul.f32 1.442695, %v1248_v16 }
 0x20a   : > { %v429_v18 = vpop.xlane.xlu1 %428  ;;  %v445_v19 = vpop.xlane.xlu0 %444 }
 0x20b   : > { %v1251_v20 = vsub.f32 %v356_v50, %v429_v18  ;;  %898 = vpow2.f32 %v488_v17  ;;  %v1254_v22 = vsub.f32 %v396_v51, %v445_v19 }
 0x20d   : > { %v476_v23 = vmul.f32 1.442695, %v1251_v20  ;;  %v492_v27 = vmul.f32 1.442695, %v1254_v22 }
 0x20e   : > { %v435_v24 = vpop.xlane.xlu1 %434  ;;  %v433_v25 = vpop.xlane.xlu0 %432 }
 0x20f   : > { %900 = vpow2.f32 %v476_v23  ;;  %v1257_v26 = vsub.f32 %v371_v52, %v435_v24  ;;  %v1260_v28 = vsub.f32 %v366_v53, %v433_v25 }
 0x210   : > { %902 = vpow2.f32 %v494_v21  ;;  %v891_v29 = vpop.eup %890 }
 0x211   : > { %v482_v30 = vmul.f32 1.442695, %v1257_v26  ;;  %506 = vadd.xlane.f32.xlu1 %v891_v29  ;;  %v893_v34 = vpop.eup %892  ;;  %v480_v35 = vmul.f32 1.442695, %v1260_v28 }
 0x212   : > { %v451_v31 = vpop.xlane.xlu1 %450  ;;  %v449_v32 = vpop.xlane.xlu0 %448 }
 0x213   : > { %904 = vpow2.f32 %v482_v30  ;;  %v1263_v33 = vsub.f32 %v411_v56, %v451_v31  ;;  %v1266_v36 = vsub.f32 %v406_v57, %v449_v32 }
 0x214   : > { %906 = vpow2.f32 %v492_v27  ;;  %v895_v37 = vpop.eup %894 }
 0x215   : > { %v498_v38 = vmul.f32 1.442695, %v1263_v33  ;;  %522 = vadd.xlane.f32.xlu1 %v893_v34  ;;  %504 = vadd.xlane.f32.xlu0 %v895_v37  ;;  %v897_v42 = vpop.eup %896  ;;  %v496_v43 = vmul.f32 1.442695, %v1266_v36 }
 0x216   : > { %v439_v39 = vpop.xlane.xlu1 %438  ;;  %v437_v40 = vpop.xlane.xlu0 %436 }
 0x217   : > { %908 = vpow2.f32 %v498_v38  ;;  %v1270_v41 = vsub.f32 %v1222_v60, %v439_v39  ;;  %v1274_v44 = vsub.f32 %v1224_v61, %v437_v40 }
 0x218   : > { %910 = vpow2.f32 %v480_v35  ;;  %v899_v45 = vpop.eup %898 }
 0x219   : > { %v486_v46 = vmul.f32 1.442695, %v1270_v41  ;;  %510 = vadd.xlane.f32.xlu1 %v897_v42  ;;  %520 = vadd.xlane.f32.xlu0 %v899_v45  ;;  %v484_v51 = vmul.f32 1.442695, %v1274_v44 }
 0x21a   : > { %v455_v47 = vpop.xlane.xlu1 %454  ;;  %v453_v48 = vpop.xlane.xlu0 %452 }
 0x21b   : > { %912 = vpow2.f32 %v486_v46  ;;  %v1278_v49 = vsub.f32 %v1226_v63, %v455_v47  ;;  %v1282_v52 = vsub.f32 %v1230_v0, %v453_v48 }
 0x21c   : > { %v901_v50 = vpop.eup %900  ;;  %914 = vpow2.f32 %v496_v43 }
 0x21d   : > { %v903_v53 = vpop.eup %902  ;;  %v502_v54 = vmul.f32 1.442695, %v1278_v49  ;;  %508 = vadd.xlane.f32.xlu0 %v901_v50  ;;  %v500_v56 = vmul.f32 1.442695, %v1282_v52 }
 0x21e   : > { %526 = vadd.xlane.f32.xlu1 %v903_v53 }
 0x21f   : > { %916 = vpow2.f32 %v502_v54 }
 0x220   : > { %v905_v55 = vpop.eup %904  ;;  %918 = vpow2.f32 %v484_v51 }
 0x221   : > { %v907_v57 = vpop.eup %906  ;;  %920 = vpow2.f32 %v500_v56 }
 0x222   : > { %514 = vadd.xlane.f32.xlu1 %v905_v55  ;;  %524 = vadd.xlane.f32.xlu0 %v907_v57 }
 0x224   : > { %v909_v58 = vpop.eup %908 }
 0x225   : > { %v911_v59 = vpop.eup %910 }
 0x226   : > { %530 = vadd.xlane.f32.xlu1 %v909_v58  ;;  %512 = vadd.xlane.f32.xlu0 %v911_v59 }
 0x228   : > { %v913_v60 = vpop.eup %912 }
 0x229   : > { %v915_v61 = vpop.eup %914 }
 0x22a   : > { %518 = vadd.xlane.f32.xlu1 %v913_v60  ;;  %528 = vadd.xlane.f32.xlu0 %v915_v61 }
 0x22c   : > { %v917_v62 = vpop.eup %916 }
 0x22d   : > { %v919_v63 = vpop.eup %918 }
 0x22e   : > { %534 = vadd.xlane.f32.xlu1 %v917_v62  ;;  %516 = vadd.xlane.f32.xlu0 %v919_v63  ;;  %v921_v0 = vpop.eup %920 }
 0x232   : > { %532 = vadd.xlane.f32.xlu0 %v921_v0 }
 0x29a   : > { %v507_v1 = vpop.xlane.xlu1 %506 }
 0x29b   : > { %922 = vlog2.f32 %v507_v1 }
 0x29e   : > { %v523_v2 = vpop.xlane.xlu1 %522  ;;  %v505_v5 = vpop.xlane.xlu0 %504 }
 0x29f   : > { %924 = vlog2.f32 %v523_v2 }
 0x2a0   : > { %926 = vlog2.f32 %v505_v5 }
 0x2a2   : > { %v511_v6 = vpop.xlane.xlu1 %510  ;;  %v521_v7 = vpop.xlane.xlu0 %520 }
 0x2a3   : > { %928 = vlog2.f32 %v511_v6 }
 0x2a4   : > { %930 = vlog2.f32 %v521_v7 }
 0x2a6   : > { %v509_v11 = vpop.xlane.xlu0 %508 }
 0x2a7   : > { %v527_v8 = vpop.xlane.xlu1 %526 }
 0x2a8   : > { %932 = vlog2.f32 %v527_v8  ;;  %v923_v12 = vpop.eup %922 }
 0x2a9   : > { %934 = vlog2.f32 %v509_v11  ;;  %v539_v13 = vmul.f32 0.6931472, %v923_v12 }
 0x2ab   : > { %v515_v14 = vpop.xlane.xlu1 %514  ;;  %v525_v17 = vpop.xlane.xlu0 %524  ;;  %v569_v18 = vsub.f32 %v1236_v4, %v539_v13 }
 0x2ac   : > { %936 = vlog2.f32 %v515_v14  ;;  %v925_v19 = vpop.eup %924 }
 0x2ad   : > { %938 = vlog2.f32 %v525_v17  ;;  %v927_v21 = vpop.eup %926  ;;  %585 = vst [vmem:[%s1143_s7 + $0x8] sm:$0xff] %v569_v18  ;;  %v555_v23 = vmul.f32 0.6931472, %v925_v19 }
 0x2ae   : > { %v537_v24 = vmul.f32 0.6931472, %v927_v21 }
 0x2af   : > { %v531_v25 = vpop.xlane.xlu1 %530  ;;  %v513_v27 = vpop.xlane.xlu0 %512  ;;  %v577_v29 = vsub.f32 %v1234_v3, %v555_v23 }
 0x2b0   : > { %940 = vlog2.f32 %v531_v25  ;;  %v929_v30 = vpop.eup %928  ;;  %v568_v31 = vsub.f32 %v1242_v10, %v537_v24 }
 0x2b1   : > { %942 = vlog2.f32 %v513_v27  ;;  %v931_v4 = vpop.eup %930  ;;  %593 = vst [vmem:[%s1143_s7 + $0x48] sm:$0xff] %v577_v29  ;;  %v543_v32 = vmul.f32 0.6931472, %v929_v30 }
 0x2b2   : > { %584 = vst [vmem:[%s1143_s7] sm:$0xff] %v568_v31  ;;  %v553_v34 = vmul.f32 0.6931472, %v931_v4 }
 0x2b3   : > { %v519_v35 = vpop.xlane.xlu1 %518  ;;  %v529_v37 = vpop.xlane.xlu0 %528  ;;  %v571_v38 = vsub.f32 %v1240_v9, %v543_v32 }
 0x2b4   : > { %944 = vlog2.f32 %v519_v35  ;;  %v576_v3 = vsub.f32 %v1246_v15, %v553_v34 }
 0x2b5   : > { %v933_v39 = vpop.eup %932  ;;  %946 = vlog2.f32 %v529_v37  ;;  %587 = vst [vmem:[%s1143_s7 + $0x18] sm:$0xff] %v571_v38 }
 0x2b6   : > { %v935_v40 = vpop.eup %934  ;;  %v559_v10 = vmul.f32 0.6931472, %v933_v39  ;;  %592 = vst [vmem:[%s1143_s7 + $0x40] sm:$0xff] %v576_v3 }
 0x2b7   : > { %v541_v42 = vmul.f32 0.6931472, %v935_v40  ;;  %v535_v43 = vpop.xlane.xlu1 %534  ;;  %v517_v45 = vpop.xlane.xlu0 %516 }
 0x2b8   : > { %v579_v46 = vsub.f32 %v1248_v16, %v559_v10  ;;  %948 = vlog2.f32 %v535_v43 }
 0x2b9   : > { %v937_v47 = vpop.eup %936  ;;  %v570_v9 = vsub.f32 %v1251_v20, %v541_v42  ;;  %950 = vlog2.f32 %v517_v45 }
 0x2ba   : > { %v939_v48 = vpop.eup %938  ;;  %595 = vst [vmem:[%s1143_s7 + $0x58] sm:$0xff] %v579_v46  ;;  %v547_v15 = vmul.f32 0.6931472, %v937_v47 }
 0x2bb   : > { %586 = vst [vmem:[%s1143_s7 + $0x10] sm:$0xff] %v570_v9  ;;  %v557_v50 = vmul.f32 0.6931472, %v939_v48  ;;  %v533_v51 = vpop.xlane.xlu0 %532 }
 0x2bc   : > { %v573_v53 = vsub.f32 %v1257_v26, %v547_v15  ;;  %952 = vlog2.f32 %v533_v51 }
 0x2bd   : > { %v941_v54 = vpop.eup %940  ;;  %v578_v16 = vsub.f32 %v1254_v22, %v557_v50 }
 0x2be   : > { %v943_v55 = vpop.eup %942  ;;  %589 = vst [vmem:[%s1143_s7 + $0x28] sm:$0xff] %v573_v53  ;;  %v563_v56 = vmul.f32 0.6931472, %v941_v54 }
 0x2bf   : > { %594 = vst [vmem:[%s1143_s7 + $0x50] sm:$0xff] %v578_v16  ;;  %v545_v20 = vmul.f32 0.6931472, %v943_v55 }
 0x2c0   : > { %v581_v57 = vsub.f32 %v1263_v33, %v563_v56 }
 0x2c1   : > { %v945_v58 = vpop.eup %944  ;;  %v572_v59 = vsub.f32 %v1260_v28, %v545_v20 }
 0x2c2   : > { %v947_v60 = vpop.eup %946  ;;  %597 = vst [vmem:[%s1143_s7 + $0x68] sm:$0xff] %v581_v57  ;;  %v551_v26 = vmul.f32 0.6931472, %v945_v58 }
 0x2c3   : > { %588 = vst [vmem:[%s1143_s7 + $0x20] sm:$0xff] %v572_v59  ;;  %v561_v61 = vmul.f32 0.6931472, %v947_v60 }
 0x2c4   : > { %v575_v22 = vsub.f32 %v1270_v41, %v551_v26 }
 0x2c5   : > { %v949_v62 = vpop.eup %948  ;;  %v580_v63 = vsub.f32 %v1266_v36, %v561_v61 }
 0x2c6   : > { %v951_v0 = vpop.eup %950  ;;  %591 = vst [vmem:[%s1143_s7 + $0x38] sm:$0xff] %v575_v22  ;;  %v567_v1 = vmul.f32 0.6931472, %v949_v62 }
 0x2c7   : > { %596 = vst [vmem:[%s1143_s7 + $0x60] sm:$0xff] %v580_v63  ;;  %v549_v33 = vmul.f32 0.6931472, %v951_v0 }
 0x2c8   : > { %v583_v28 = vsub.f32 %v1278_v49, %v567_v1 }
 0x2c9   : > { %v953_v2 = vpop.eup %952  ;;  %v574_v5 = vsub.f32 %v1274_v44, %v549_v33 }
 0x2ca   : > { %599 = vst [vmem:[%s1143_s7 + $0x78] sm:$0xff] %v583_v28  ;;  %v565_v6 = vmul.f32 0.6931472, %v953_v2 }
 0x2cb   : > { %590 = vst [vmem:[%s1143_s7 + $0x30] sm:$0xff] %v574_v5 }
 0x2cc   : > { %v582_v7 = vsub.f32 %v1282_v52, %v565_v6 }
 0x2ce   : > { %598 = vst [vmem:[%s1143_s7 + $0x70] sm:$0xff] %v582_v7 }
 0x2cf PF: > { %s21_s20 = sadd.s32 1, %s1062_s20  }
 0x2d0   : > { %p18_p7 = scmp.ge.s32.totalorder %s21_s20, 4  }
 0x2d2   :  { %20 = sbr.rel (!%p18_p7) target bundleno = 16 (0x10), region = 138 }
 0x2d7   :  { %622 = vsyncpa [#allocation7], 1 }
 0x2d8   :  { %624 = vsyncpa [#allocation7 + $0x1], 1 }
 0x2d9   :  { %625 = vsyncmov [#allocation3] }
 0x2dc   :  { %s626_s18 = vpop.sfrf %625 }
 0x2dd   :  { %p720_p8 = scmp.ne.s32.totalorder %s626_s18, 0 }
 0x2df   :  { %630 = shalt.err (%p720_p8)  }
 0x2e0   :  { %632 = vsyncmov [#allocation3 + $0x1] }
 0x2e3   :  { %s633_s19 = vpop.sfrf %632 }
 0x2e4   :  { %p721_p9 = scmp.ne.s32.totalorder %s633_s19, 0 }
 0x2e6   :  { %637 = shalt.err (%p721_p9)  }

</bundles_post_ra>
